<compile_context>
chip_gen: v6e
topology: v6e:2x2x1
jax: 0.10.0
libtpu: 0.0.40
codegen_flags: <defaults>
</compile_context>

<pallas_src>
import jax
import jax.numpy as jnp
from jax import lax
from jax.experimental import pallas as pl
from jax.experimental.pallas import tpu as pltpu


# dot_general dimension numbers contracting dim 1 of both operands
# (the flash-attention "q @ k^T" pattern): (H, K) x (TB, K) -> (H, TB).
_NT_DIMS = (((1,), (1,)), ((), ()))


# ---------------------------------------------------------------------------
# Kernels.  x arrives in natural layout (TB, D_in); everything downstream is
# lane-major: h = (H, TB), output = (out_size, TB).  Weights are resident.
# ---------------------------------------------------------------------------
def _positive_mlp_kernel_vec(x_ref, w1t_ref, b1_ref, w2c_ref, b2_ref, o_ref):
    """out_size == 1 path: layer 2 as VPU multiply + sublane reduce, lane-dense out."""
    h = lax.dot_general(w1t_ref[...], x_ref[...], _NT_DIMS,
                        preferred_element_type=jnp.float32)            # (H, TB) f32
    h = jnp.maximum(h + b1_ref[...], 0.0)                              # bias + ReLU
    y = jnp.sum(h * w2c_ref[...], axis=0, keepdims=True) + b2_ref[...]  # (1, TB)
    o_ref[...] = jnp.abs(y).astype(o_ref.dtype)                        # torch.abs


def _positive_mlp_kernel_mxu(x_ref, w1t_ref, b1_ref, w2t_ref, b2_ref, o_ref):
    """General out_size path: both layers on the MXU, lane-dense (out, TB) out."""
    h = lax.dot_general(w1t_ref[...], x_ref[...], _NT_DIMS,
                        preferred_element_type=jnp.float32)            # (H, TB) f32
    h = jnp.maximum(h + b1_ref[...], 0.0)
    y = jnp.dot(w2t_ref[...], h,
                preferred_element_type=jnp.float32) + b2_ref[...]       # (out, TB)
    o_ref[...] = jnp.abs(y).astype(o_ref.dtype)


# ---------------------------------------------------------------------------
# Wrapper helpers.
# ---------------------------------------------------------------------------
def _round_up(n, m):
    return ((n + m - 1) // m) * m


def _vmem_limit_bytes():
    """Generation-aware scoped-VMEM limit (v5e/v6e: 128 MiB phys, v7x: 64 MiB/TC)."""
    phys = None
    try:
        phys = getattr(pltpu.get_tpu_info(), "vmem_capacity_bytes", None)
    except Exception:
        phys = None
    if not phys:
        phys = 64 * 1024 * 1024            # unknown -> assume the smallest (v7x-like)
    if phys <= 64 * 1024 * 1024:
        return 48 * 1024 * 1024            # keep headroom inside v7x's 64 MiB
    return 96 * 1024 * 1024                # v5e / v6e (128 MiB physical)


def _pick_batch_tile(B, D_in, H, out_size, x_itemsize, vmem_limit):
    """Largest lane-aligned batch tile whose kernel-side VMEM footprint fits."""
    # Worst-case VMEM bytes per batch row (lane-padded (8,128) tiling):
    per_row = (2 * _round_up(D_in, 128) * x_itemsize      # streamed x, double-buffered
               + 2 * _round_up(out_size, 8) * 4           # output slab, double-buffered
               + 2 * _round_up(H, 8) * 4)                 # hidden-layer f32 temporaries
    budget = vmem_limit // 2                              # headroom: weights, spills, scratch
    tb = max(128, (budget // per_row) // 128 * 128)
    return min(tb, 64 * 1024)


def positive_mlp(x, w1, b1, w2, b2):
    """abs(relu(x @ w1 + b1) @ w2 + b2) in one batch-tiled pallas_call.

    x:  (B, D_in)             -- consumed in natural layout; no wrapper copies of x
    w1: (D_in, H)             (= PyTorch features[0].weight.T)
    b1: (H,) or (1, H)
    w2: (H, out_size)         (= PyTorch features[2].weight.T)
    b2: (out_size,) or (1, out_size)
    """
    B, D_in = x.shape
    H = w1.shape[1]
    out_size = w2.shape[1]

    # Tiny resident operands: reshaping/casting them in the wrapper is free.
    w1t = jnp.transpose(w1).astype(x.dtype)               # (H, D_in); matmul dtype = x dtype
    b1c = jnp.asarray(b1, jnp.float32).reshape(H, 1)
    b2c = jnp.asarray(b2, jnp.float32).reshape(out_size, 1)

    vmem_limit = _vmem_limit_bytes()
    tb_max = _pick_batch_tile(B, D_in, H, out_size, x.dtype.itemsize, vmem_limit)

    if B <= 128:
        TB = B                                             # single block, full-dim shapes
    else:
        # >= 2 lane-aligned tiles so ("parallel",) can use both v7x TensorCores.
        TB = min(tb_max, _round_up(-(-B // 2), 128))
    grid = (pl.cdiv(B, TB),)                               # ragged last block handled by Pallas

    if out_size == 1:
        kernel = _positive_mlp_kernel_vec
        w2_arg = jnp.asarray(w2, jnp.float32).reshape(H, 1)        # (H, 1) weight column
        b2_arg = b2c.reshape(1, 1)
        w2_spec = pl.BlockSpec((H, 1), lambda i: (0, 0))
        b2_spec = pl.BlockSpec((1, 1), lambda i: (0, 0))
    else:
        kernel = _positive_mlp_kernel_mxu
        w2_arg = jnp.transpose(jnp.asarray(w2, jnp.float32))       # (out, H)
        b2_arg = b2c                                               # (out, 1)
        w2_spec = pl.BlockSpec((out_size, H), lambda i: (0, 0))
        b2_spec = pl.BlockSpec((out_size, 1), lambda i: (0, 0))

    flops = int(2 * B * D_in * H + 2 * B * H * out_size + 4 * B * H)
    bytes_accessed = int(x.size * x.dtype.itemsize
                         + w1t.size * w1t.dtype.itemsize
                         + b1c.size * 4 + w2_arg.size * 4 + b2_arg.size * 4
                         + B * out_size * 4)

    out_t = pl.pallas_call(
        kernel,
        out_shape=jax.ShapeDtypeStruct((out_size, B), jnp.float32),
        grid=grid,
        in_specs=[
            pl.BlockSpec((TB, D_in), lambda i: (i, 0)),    # streamed x, natural layout
            pl.BlockSpec((H, D_in), lambda i: (0, 0)),     # resident weights / biases
            pl.BlockSpec((H, 1), lambda i: (0, 0)),
            w2_spec,
            b2_spec,
        ],
        out_specs=pl.BlockSpec((out_size, TB), lambda i: (0, i)),   # lane-dense output slab
        compiler_params=pltpu.CompilerParams(
            dimension_semantics=("parallel",),             # independent batch tiles
            vmem_limit_bytes=vmem_limit,                   # generation-aware budget
        ),
        cost_estimate=pl.CostEstimate(
            flops=flops, transcendentals=0, bytes_accessed=bytes_accessed),
    )(x, w1t, b1c, w2_arg, b2_arg)

    # Tiny (out_size, B) -> (B, out_size) transpose (~1/16 of x traffic for out=1).
    return jnp.transpose(out_t)


def positive_mlp_ref(x, w1, b1, w2, b2):
    """Pure-JAX reference for correctness checking."""
    xf = x.astype(jnp.float32)
    h = jnp.maximum(xf @ w1 + jnp.asarray(b1, jnp.float32).reshape(1, -1), 0.0)
    return jnp.abs(h @ w2 + jnp.asarray(b2, jnp.float32).reshape(1, -1))


if __name__ == "__main__":
    # Small shapes consistent with the module's forward: x is (batch, input_dim).
    batch, input_dim, hidden, out_size = 256, 16, 32, 1

    key = jax.random.PRNGKey(0)
    kx, kw1, kb1, kw2, kb2 = jax.random.split(key, 5)

    x = jax.random.normal(kx, (batch, input_dim), dtype=jnp.float32)

    # Deterministic init mimicking PyTorch Linear default (uniform +/- 1/sqrt(fan_in)),
    # stored as (in, out) == PyTorch weight.T
    bnd1 = 1.0 / jnp.sqrt(jnp.float32(input_dim))
    bnd2 = 1.0 / jnp.sqrt(jnp.float32(hidden))
    w1 = jax.random.uniform(kw1, (input_dim, hidden), jnp.float32, -bnd1, bnd1)
    b1 = jax.random.uniform(kb1, (1, hidden), jnp.float32, -bnd1, bnd1)
    w2 = jax.random.uniform(kw2, (hidden, out_size), jnp.float32, -bnd2, bnd2)
    b2 = jax.random.uniform(kb2, (1, out_size), jnp.float32, -bnd2, bnd2)

    ref = positive_mlp_ref(x, w1, b1, w2, b2)

    # 1) out_size == 1, two-tile "parallel" grid (B=256 -> TB=128, grid=(2,)).
    out = jax.block_until_ready(positive_mlp(x, w1, b1, w2, b2))
    assert out.shape == (batch, out_size)
    assert jnp.allclose(out, ref, atol=1e-4, rtol=1e-4)

    # 2) ragged trailing block (B=200 -> TB=128, grid=(2,), masked boundary stores).
    out_rag = jax.block_until_ready(positive_mlp(x[:200], w1, b1, w2, b2))
    assert out_rag.shape == (200, out_size)
    assert jnp.allclose(out_rag, ref[:200], atol=1e-4, rtol=1e-4)

    # 3) small single full-dim block (B=64 -> TB=64, grid=(1,)).
    out_small = jax.block_until_ready(positive_mlp(x[:64], w1, b1, w2, b2))
    assert jnp.allclose(out_small, ref[:64], atol=1e-4, rtol=1e-4)

    # 4) bf16 activations end-to-end (no wrapper cast of x; only w1 is cast to match).
    out_bf16 = jax.block_until_ready(
        positive_mlp(x.astype(jnp.bfloat16), w1, b1, w2, b2))
    assert out_bf16.shape == (batch, out_size)
    assert jnp.allclose(out_bf16, ref, atol=5e-2, rtol=5e-2)

    # 5) out_size > 1 exercises the MXU second-layer kernel.
    out4 = 4
    w2b = jax.random.uniform(kw2, (hidden, out4), jnp.float32, -bnd2, bnd2)
    b2b = jax.random.uniform(kb2, (1, out4), jnp.float32, -bnd2, bnd2)
    refb = positive_mlp_ref(x, w1, b1, w2b, b2b)
    outb = jax.block_until_ready(positive_mlp(x, w1, b1, w2b, b2b))
    assert outb.shape == (batch, out4)
    assert jnp.allclose(outb, refb, atol=1e-4, rtol=1e-4)

    print("KERNEL_OK")
</pallas_src>

<mosaic_0001>
module attributes {stable_mosaic.version = 11 : i64} {
  func.func @_positive_mlp_kernel_vec(%arg0: i32, %arg1: memref<128x16xf32, #tpu.memory_space<vmem>>, %arg2: memref<32x16xf32, #tpu.memory_space<vmem>>, %arg3: memref<32x1xf32, #tpu.memory_space<vmem>>, %arg4: memref<32x1xf32, #tpu.memory_space<vmem>>, %arg5: memref<1x1xf32, #tpu.memory_space<vmem>>, %arg6: memref<1x128xf32, #tpu.memory_space<vmem>>) attributes {dimension_semantics = [#tpu.dimension_semantics<parallel>], iteration_bounds = array<i64: 2>, scalar_prefetch = 0 : i64, scratch_operands = 0 : i64, tpu.core_type = #tpu.core_type<tc>, window_params = [{transform_indices = @transform_0, window_bounds = array<i64: 128, 16>}, {pipeline_mode = #tpu.pipeline_mode<synchronous>, transform_indices = @transform_1, window_bounds = array<i64: 32, 16>}, {pipeline_mode = #tpu.pipeline_mode<synchronous>, transform_indices = @transform_2, window_bounds = array<i64: 32, 1>}, {pipeline_mode = #tpu.pipeline_mode<synchronous>, transform_indices = @transform_3, window_bounds = array<i64: 32, 1>}, {pipeline_mode = #tpu.pipeline_mode<synchronous>, transform_indices = @transform_4, window_bounds = array<i64: 1, 1>}, {transform_indices = @transform_5, window_bounds = array<i64: 1, 128>}]} {
    %c0 = arith.constant 0 : index
    %c0_0 = arith.constant 0 : index
    %0 = vector.load %arg2[%c0, %c0_0] : memref<32x16xf32, #tpu.memory_space<vmem>>, vector<32x16xf32>
    %c0_1 = arith.constant 0 : index
    %c0_2 = arith.constant 0 : index
    %1 = vector.load %arg1[%c0_1, %c0_2] : memref<128x16xf32, #tpu.memory_space<vmem>>, vector<128x16xf32>
    %cst = arith.constant dense<0.000000e+00> : vector<32x128xf32>
    %2 = tpu.matmul %0, %1, %cst {dimension_numbers = #tpu.dot_dimension_numbers<[1], [1], [0], [0], [0, 0, 1, 0], [], []>} : vector<32x16xf32>, vector<128x16xf32>, vector<32x128xf32> -> vector<32x128xf32>
    %c0_3 = arith.constant 0 : index
    %c0_4 = arith.constant 0 : index
    %3 = vector.load %arg3[%c0_3, %c0_4] : memref<32x1xf32, #tpu.memory_space<vmem>>, vector<32x1xf32>
    %4 = vector.broadcast %3 : vector<32x1xf32> to vector<32x128xf32>
    %5 = arith.addf %2, %4 : vector<32x128xf32>
    %cst_5 = arith.constant 0.000000e+00 : f32
    %6 = vector.broadcast %cst_5 : f32 to vector<32x128xf32>
    %7 = arith.maximumf %5, %6 : vector<32x128xf32>
    %c0_6 = arith.constant 0 : index
    %c0_7 = arith.constant 0 : index
    %8 = vector.load %arg4[%c0_6, %c0_7] : memref<32x1xf32, #tpu.memory_space<vmem>>, vector<32x1xf32>
    %9 = vector.broadcast %8 : vector<32x1xf32> to vector<32x128xf32>
    %10 = arith.mulf %7, %9 : vector<32x128xf32>
    %cst_8 = arith.constant dense<0.000000e+00> : vector<128xf32>
    %11 = vector.multi_reduction <add>, %10, %cst_8 [0] : vector<32x128xf32> to vector<128xf32>
    %12 = vector.shape_cast %11 : vector<128xf32> to vector<1x128xf32>
    %c0_9 = arith.constant 0 : index
    %c0_10 = arith.constant 0 : index
    %13 = vector.load %arg5[%c0_9, %c0_10] : memref<1x1xf32, #tpu.memory_space<vmem>>, vector<1x1xf32>
    %14 = vector.broadcast %13 : vector<1x1xf32> to vector<1x128xf32>
    %15 = arith.addf %12, %14 : vector<1x128xf32>
    %16 = math.absf %15 : vector<1x128xf32>
    %c0_11 = arith.constant 0 : index
    %c0_12 = arith.constant 0 : index
    %17 = vector.load %arg6[%c0_11, %c0_12] : memref<1x128xf32, #tpu.memory_space<vmem>>, vector<1x128xf32>
    tpu.vector_store %arg6[%c0_11, %c0_12], %16 {strides = array<i32>} : memref<1x128xf32, #tpu.memory_space<vmem>>, vector<1x128xf32>,
    return
  }
  func.func @transform_0(%arg0: i32) -> (i32, i32) {
    %c0_i32 = arith.constant 0 : i32
    %c0_i32_0 = arith.constant 0 : i32
    return %arg0, %c0_i32 : i32, i32
  }
  func.func @transform_1(%arg0: i32) -> (i32, i32) {
    %c0_i32 = arith.constant 0 : i32
    %c0_i32_0 = arith.constant 0 : i32
    %c0_i32_1 = arith.constant 0 : i32
    return %c0_i32, %c0_i32_0 : i32, i32
  }
  func.func @transform_2(%arg0: i32) -> (i32, i32) {
    %c0_i32 = arith.constant 0 : i32
    %c0_i32_0 = arith.constant 0 : i32
    %c0_i32_1 = arith.constant 0 : i32
    return %c0_i32, %c0_i32_0 : i32, i32
  }
  func.func @transform_3(%arg0: i32) -> (i32, i32) {
    %c0_i32 = arith.constant 0 : i32
    %c0_i32_0 = arith.constant 0 : i32
    %c0_i32_1 = arith.constant 0 : i32
    return %c0_i32, %c0_i32_0 : i32, i32
  }
  func.func @transform_4(%arg0: i32) -> (i32, i32) {
    %c0_i32 = arith.constant 0 : i32
    %c0_i32_0 = arith.constant 0 : i32
    %c0_i32_1 = arith.constant 0 : i32
    return %c0_i32, %c0_i32_0 : i32, i32
  }
  func.func @transform_5(%arg0: i32) -> (i32, i32) {
    %c0_i32 = arith.constant 0 : i32
    %c0_i32_0 = arith.constant 0 : i32
    return %c0_i32, %arg0 : i32, i32
  }
}

</mosaic_0001>

<bundles_post_ra>
// kernel: tpu_custom_call.1
= control target key start
LH: loop header
LB: loop body
LE: loop exit
PB: predicated region body
PF: predicated region fallthrough
CT: control target
= control target key end

     0   :  { %s1004_s0 = inlined_call_operand.vmem [shape: f32[256,16], index: 0, kind: input, shape index: {}]   ;;  %s1005_s1 = inlined_call_operand.vmem [shape: f32[32,16], index: 1, kind: input, shape index: {}]   ;;  %s1006_s2 = inlined_call_operand.vmem [shape: f32[32,1], index: 2, kind: input, shape index: {}]   ;;  %s1007_s3 = inlined_call_operand.vmem [shape: f32[32,1], index: 3, kind: input, shape index: {}]   ;;  %s1008_s4 = inlined_call_operand.<no memory space> [shape: f32[1,1], index: 4, kind: input, shape index: {}]   ;;  %s1009_s5 = inlined_call_operand.hbm [shape: f32[1,256], index: 5, kind: output, shape index: {}]  }
   0x1   :  { %v10_v0 = vstv %s1008_s4 }
   0x2   :  { %11 = vst [vmem:[#allocation2] sm:$0x1] %v10_v0 }
   0x3   :  { %12 = vsyncpa [#allocation4], 0 }
   0x4   :  { %14 = vsyncpa [#allocation4 + $0x1], 0  ;;  %s796_s20 = smov 0   ;;  %s798_s21 = smov 0  }
   0x5   :  { %s800_s22 = smov 0   ;;  %s802_s23 = smov 0  }
   0x6 LB: > { %s537_s4 = sadd.s32 4294967295, %s759_s23   ;;  %s538_s24 = sadd.s32 4294967294, %s759_s23   ;;  %s759_s23 = sphi %s802_s23, %s1015_s23   ;;  %s755_s22 = sphi %s800_s22, %s1014_s22   ;;  %s751_s21 = sphi %s798_s21, %s1013_s21   ;;  %s747_s20 = sphi %s796_s20, %s1012_s20  }
   0x7   : > { %s819_s25 = sadd.s32 1, %s759_s23   ;;  %s137_s26 = sadd.s32 1, %s755_s22 }
   0x8   : > { %s134_s27 = ssub.s32 %s759_s23, %s819_s25  ;;  %p147_p0 = scmp.ne.s32.totalorder %s755_s22, %s751_s21 }
   0x9   : > { %p135_p1 = scmp.eq.s32.totalorder %s134_s27, 0  ;;  %p148_p2 = scmp.eq.s32.totalorder %s537_s4, 1 }
   0xa   : > { %p153_p3 = scmp.ne.s32.totalorder %s751_s21, %s747_s20  ;;  %p154_p4 = scmp.eq.s32.totalorder %s538_s24, 1 }
   0xb   : > { %s829_s28 = scalar_select %p135_p1, %s755_s22, %s137_s26  }
   0xc   : > { %p831_p5 = por %p148_p2, %p147_p0  ;;  %p835_p6 = por %p154_p4, %p153_p3 }
   0xd   : > { %p541_p7 = scmp.ge.s32.totalorder %s759_s23, 1  ;;  %p193_p8 = scmp.lt.s32.totalorder %s759_s23, 3 }
   0xf   : > { %p194_p9 = pnand %p541_p7, %p193_p8 }
  0x10   : > { %s841_s6 = sshll.u32 (!%p194_p9), %s537_s4, 4  ;;  %s218_s19 = sand.u32 (!%p194_p9), 1, %s751_s21  }
  0x11   : > { %197 = sbr.rel (%p194_p9) target bundleno = 327 (0x147), region = 40  ;;  %p221_p10 = scmp.lt.s32.totalorder (!%p194_p9), %s841_s6, 31 }
  0x12   : > { %s481_s7 = scalar_lea.hbm (!%p194_p9), %s1009_s5, %s841_s6  ;;  %s471_s8 = scalar_lea.sflag (!%p194_p9), [#allocation4], %s218_s19 }
  0x13   : > { %s762_s10 = smov (!%p194_p9), [#allocation3]  }
  0x14   : > { %s703_s11 = sshll.u32 (!%p194_p9), %s762_s10, 4  ;;  %s704_s11 = int_to_ptr.vmem [resolvable:$false] %s703_s11 }
  0x15   : > { %s705_s12 = scalar_lea.vmem (!%p194_p9), %s704_s11, 32 }
  0x16   : > { %vm270_vm0 = vcmask 130048   ;;  %v226_v1 = vld [vmem:[%s1005_s1] sm:$0xff]  ;;  %v228_v2 = vld [vmem:[%s1005_s1 + $0x10] sm:$0xff]  ;;  %v761_v4 = vmov 0   ;;  %s222_s15 = scalar_select %p221_p10, %s841_s6, 31  ;;  %v247_v6 = vld [vmem:[%s1006_s2 + $0x8] sm:$0xff]  ;;  %v463_v57 = vlaneseq }
  0x17   : > { %619 = vmatprep.mubr.msk.f32.mxu0 %vm270_vm0, %v226_v1  ;;  %622 = vmatprep.mubr.msk.f32.mxu1 %vm270_vm0, %v228_v2  ;;  %v246_v3 = vld [vmem:[%s1006_s2] sm:$0xff]  ;;  %v248_v5 = vld [vmem:[%s1006_s2 + $0x10] sm:$0xff]  ;;  %v249_v7 = vld [vmem:[%s1006_s2 + $0x18] sm:$0xff] }
  0x18   : > { %697 = vset.pattern.permute.xlu0 %v761_v4  ;;  %698 = vset.pattern.permute.xlu1 %v761_v4  ;;  %s543_s4 = sshll.u32 %s222_s15, 3  ;;  %v420_v10 = vld [vmem:[%s1007_s3] sm:$0xff]  ;;  %v421_v11 = vld [vmem:[%s1007_s3 + $0x8] sm:$0xff]  ;;  %v422_v13 = vld [vmem:[%s1007_s3 + $0x10] sm:$0xff]  ;;  %v464_v60 = vshrl.u32 %v463_v57, 7 }
  0x19   : > { %252 = vperm.xlu0 %697, %v246_v3   ;;  %262 = vperm.xlu1 %698, %v248_v5   ;;  %s868_s27 = scalar_lea.vmem %s1004_s0, %s543_s4  ;;  %v423_v14 = vld [vmem:[%s1007_s3 + $0x18] sm:$0xff]  ;;  %v457_v16 = vld [vmem:[#allocation2] sm:$0x1]  ;;  %v227_v29 = vld [vmem:[%s1005_s1 + $0x8] sm:$0xff]  ;;  %s219_s4 = scalar_lea.vmem [#allocation3], %s218_s19 }
  0x1a   : > { %v245_v8 = vld [vmem:[%s868_s27 + $0x78] sm:$0xff]  ;;  %v244_v9 = vld [vmem:[%s868_s27 + $0x70] sm:$0xff]  ;;  %v243_v12 = vld [vmem:[%s868_s27 + $0x68] sm:$0xff]  ;;  %v465_v63 = vsub.s32 0, %v464_v60  ;;  %s483_s24 = sshll.u32 %s219_s4, 4  ;;  %s484_s24 = int_to_ptr.vmem [resolvable:$true] %s483_s24 }
  0x1b   : > { %587 = vmatprep.subr.msk.mxu0 %vm270_vm0, %v245_v8  ;;  %625 = vmatprep.subr.msk.mxu1 %vm270_vm0, %v245_v8  ;;  %v242_v15 = vld [vmem:[%s868_s27 + $0x60] sm:$0xff]  ;;  %v241_v17 = vld [vmem:[%s868_s27 + $0x58] sm:$0xff]  ;;  %v240_v18 = vld [vmem:[%s868_s27 + $0x50] sm:$0xff]  ;;  %s699_s9 = scalar_lea.vmem %s484_s24, 16  ;;  %p706_p0 = scmp.lt.s32.totalorder %s484_s24, %s704_s11 }
  0x1c   : > { %588 = vmatpush3.xpose.msk.msra.mxu0 %vm270_vm0, %v245_v8  ;;  %641 = vmatpush3.xpose.msk.msra.mxu1 %vm270_vm0, %v245_v8  ;;  %v239_v19 = vld [vmem:[%s868_s27 + $0x48] sm:$0xff]  ;;  %v238_v20 = vld [vmem:[%s868_s27 + $0x40] sm:$0xff]  ;;  %v237_v21 = vld [vmem:[%s868_s27 + $0x38] sm:$0xff]  ;;  %p700_p11 = scmp.ne.s32.totalorder %s484_s24, %s699_s9  ;;  %p707_p1 = scmp.lt.s32.totalorder %s705_s12, %s699_s9 }
  0x1d   : > { %257 = vperm.xlu0 %697, %v247_v6   ;;  %267 = vperm.xlu1 %698, %v249_v7   ;;  %v236_v22 = vld [vmem:[%s868_s27 + $0x30] sm:$0xff]  ;;  %v235_v23 = vld [vmem:[%s868_s27 + $0x28] sm:$0xff]  ;;  %v234_v24 = vld [vmem:[%s868_s27 + $0x20] sm:$0xff] }
  0x1e   : > { %589 = vmatprep.subr.msk.mxu0 %vm270_vm0, %v244_v9  ;;  %626 = vmatprep.subr.msk.mxu1 %vm270_vm0, %v244_v9  ;;  %v233_v25 = vld [vmem:[%s868_s27 + $0x18] sm:$0xff]  ;;  %v232_v26 = vld [vmem:[%s868_s27 + $0x10] sm:$0xff]  ;;  %v231_v27 = vld [vmem:[%s868_s27 + $0x8] sm:$0xff]  ;;  %p701_p12 = pnand %p700_p11, %p831_p5  ;;  %p708_p2 = por %p707_p1, %p706_p0 }
  0x1f   : > { %v230_v28 = vld [vmem:[%s868_s27] sm:$0xff]  ;;  %v229_v30 = vld [vmem:[%s1005_s1 + $0x18] sm:$0xff] }
  0x20   : > { %590 = vmatpush3.xpose.msk.msra.mxu0 %vm270_vm0, %v244_v9  ;;  %642 = vmatpush3.xpose.msk.msra.mxu1 %vm270_vm0, %v244_v9  ;;  %p702_p13 = pneg %p701_p12 }
  0x21   : > { %426 = vperm.xlu0 %697, %v420_v10   ;;  %431 = vperm.xlu1 %698, %v421_v11  }
  0x22   : > { %591 = vmatprep.subr.msk.mxu0 %vm270_vm0, %v243_v12  ;;  %627 = vmatprep.subr.msk.mxu1 %vm270_vm0, %v243_v12  ;;  %p709_p3 = pnand %p708_p2, %p702_p13 }
  0x24   : > { %592 = vmatpush3.xpose.msk.msra.mxu0 %vm270_vm0, %v243_v12  ;;  %643 = vmatpush3.xpose.msk.msra.mxu1 %vm270_vm0, %v243_v12 }
  0x25   : > { %436 = vperm.xlu0 %697, %v422_v13   ;;  %441 = vperm.xlu1 %698, %v423_v14  }
  0x26   : > { %593 = vmatprep.subr.msk.mxu0 %vm270_vm0, %v242_v15  ;;  %628 = vmatprep.subr.msk.mxu1 %vm270_vm0, %v242_v15 }
  0x28   : > { %594 = vmatpush3.xpose.msk.msra.mxu0 %vm270_vm0, %v242_v15  ;;  %644 = vmatpush3.xpose.msk.msra.mxu1 %vm270_vm0, %v242_v15 }
  0x29   : > { %460 = vperm.xlu0 %697, %v457_v16   ;;  %595 = vmatprep.subr.msk.mxu0 %vm270_vm0, %v241_v17 }
  0x2a   : > { %629 = vmatprep.subr.msk.mxu1 %vm270_vm0, %v241_v17 }
  0x2c   : > { %596 = vmatpush3.xpose.msk.msra.mxu0 %vm270_vm0, %v241_v17  ;;  %645 = vmatpush3.xpose.msk.msra.mxu1 %vm270_vm0, %v241_v17 }
  0x2d   : > { %597 = vmatprep.subr.msk.mxu0 %vm270_vm0, %v240_v18  ;;  %630 = vmatprep.subr.msk.mxu1 %vm270_vm0, %v240_v18 }
  0x30   : > { %598 = vmatpush3.xpose.msk.msra.mxu0 %vm270_vm0, %v240_v18  ;;  %646 = vmatpush3.xpose.msk.msra.mxu1 %vm270_vm0, %v240_v18 }
  0x31   : > { %599 = vmatprep.subr.msk.mxu0 %vm270_vm0, %v239_v19  ;;  %631 = vmatprep.subr.msk.mxu1 %vm270_vm0, %v239_v19 }
  0x34   : > { %600 = vmatpush3.xpose.msk.msra.mxu0 %vm270_vm0, %v239_v19  ;;  %647 = vmatpush3.xpose.msk.msra.mxu1 %vm270_vm0, %v239_v19 }
  0x35   : > { %601 = vmatprep.subr.msk.mxu0 %vm270_vm0, %v238_v20  ;;  %632 = vmatprep.subr.msk.mxu1 %vm270_vm0, %v238_v20 }
  0x38   : > { %602 = vmatpush3.xpose.msk.msra.mxu0 %vm270_vm0, %v238_v20  ;;  %648 = vmatpush3.xpose.msk.msra.mxu1 %vm270_vm0, %v238_v20 }
  0x39   : > { %603 = vmatprep.subr.msk.mxu0 %vm270_vm0, %v237_v21  ;;  %633 = vmatprep.subr.msk.mxu1 %vm270_vm0, %v237_v21 }
  0x3c   : > { %604 = vmatpush3.xpose.msk.msra.mxu0 %vm270_vm0, %v237_v21  ;;  %649 = vmatpush3.xpose.msk.msra.mxu1 %vm270_vm0, %v237_v21 }
  0x3d   : > { %605 = vmatprep.subr.msk.mxu0 %vm270_vm0, %v236_v22  ;;  %634 = vmatprep.subr.msk.mxu1 %vm270_vm0, %v236_v22 }
  0x40   : > { %606 = vmatpush3.xpose.msk.msra.mxu0 %vm270_vm0, %v236_v22  ;;  %650 = vmatpush3.xpose.msk.msra.mxu1 %vm270_vm0, %v236_v22 }
  0x41   : > { %607 = vmatprep.subr.msk.mxu0 %vm270_vm0, %v235_v23  ;;  %635 = vmatprep.subr.msk.mxu1 %vm270_vm0, %v235_v23 }
  0x44   : > { %608 = vmatpush3.xpose.msk.msra.mxu0 %vm270_vm0, %v235_v23  ;;  %651 = vmatpush3.xpose.msk.msra.mxu1 %vm270_vm0, %v235_v23 }
  0x45   : > { %609 = vmatprep.subr.msk.mxu0 %vm270_vm0, %v234_v24  ;;  %636 = vmatprep.subr.msk.mxu1 %vm270_vm0, %v234_v24 }
  0x48   : > { %610 = vmatpush3.xpose.msk.msra.mxu0 %vm270_vm0, %v234_v24  ;;  %652 = vmatpush3.xpose.msk.msra.mxu1 %vm270_vm0, %v234_v24 }
  0x49   : > { %611 = vmatprep.subr.msk.mxu0 %vm270_vm0, %v233_v25  ;;  %637 = vmatprep.subr.msk.mxu1 %vm270_vm0, %v233_v25 }
  0x4c   : > { %612 = vmatpush3.xpose.msk.msra.mxu0 %vm270_vm0, %v233_v25  ;;  %653 = vmatpush3.xpose.msk.msra.mxu1 %vm270_vm0, %v233_v25 }
  0x4d   : > { %613 = vmatprep.subr.msk.mxu0 %vm270_vm0, %v232_v26  ;;  %638 = vmatprep.subr.msk.mxu1 %vm270_vm0, %v232_v26 }
  0x50   : > { %614 = vmatpush3.xpose.msk.msra.mxu0 %vm270_vm0, %v232_v26  ;;  %654 = vmatpush3.xpose.msk.msra.mxu1 %vm270_vm0, %v232_v26 }
  0x51   : > { %615 = vmatprep.subr.msk.mxu0 %vm270_vm0, %v231_v27  ;;  %639 = vmatprep.subr.msk.mxu1 %vm270_vm0, %v231_v27 }
  0x54   : > { %616 = vmatpush3.xpose.msk.msra.mxu0 %vm270_vm0, %v231_v27  ;;  %655 = vmatpush3.xpose.msk.msra.mxu1 %vm270_vm0, %v231_v27 }
  0x55   : > { %617 = vmatprep.subr.msk.mxu0 %vm270_vm0, %v230_v28  ;;  %640 = vmatprep.subr.msk.mxu1 %vm270_vm0, %v230_v28 }
  0x58   : > { %618 = vmatpush3.xpose.msk.msra.mxu0 %vm270_vm0, %v230_v28  ;;  %656 = vmatpush3.xpose.msk.msra.mxu1 %vm270_vm0, %v230_v28 }
  0x5b   : > { %620 = vmatmul.mubr.msk.f32.vlgmr.msra.gmra.mxu0 %vm270_vm0, %v227_v29  ;;  %623 = vmatmul.mubr.msk.f32.vlgmr.msra.gmra.mxu1 %vm270_vm0, %v229_v30 }
  0x94   : > { %v253_v31 = vpop.permute.xlu0 %252  ;;  %v263_v32 = vpop.permute.xlu1 %262 }
  0x98   : > { %v258_v33 = vpop.permute.xlu0 %257  ;;  %v268_v34 = vpop.permute.xlu1 %267 }
  0x9c   : > { %v427_v37 = vpop.permute.xlu0 %426  ;;  %v432_v45 = vpop.permute.xlu1 %431 }
  0xa0   : > { %v437_v51 = vpop.permute.xlu0 %436  ;;  %v442_v54 = vpop.permute.xlu1 %441 }
  0xa4   : > { %v461_v1 = vpop.permute.xlu0 %460 }
  0xa5   : > { %v466_v3 = vrot.slane %v461_v1, %v465_v63 }
 0x11b   : > { %v621_v35 = vpop.f32.mrf.mxu0  ;;  %v624_v36 = vpop.f32.mrf.mxu1 }
 0x11c   : > { %v403_v38 = vadd.f32 %v621_v35, %v258_v33  ;;  %v413_v42 = vadd.f32 %v624_v36, %v268_v34 }
 0x11d   : > { %v397_v39 = vpop.f32.mrf.mxu0  ;;  %v407_v40 = vpop.f32.mrf.mxu1 }
 0x11e   : > { %v417_v41 = vmax.f32 %v403_v38, 0.0  ;;  %v398_v43 = vadd.f32 %v397_v39, %v253_v31  ;;  %v408_v44 = vadd.f32 %v407_v40, %v263_v32  ;;  %v419_v49 = vmax.f32 %v413_v42, 0.0 }
 0x120   : > { %v416_v46 = vmax.f32 %v398_v43, 0.0  ;;  %v418_v47 = vmax.f32 %v408_v44, 0.0  ;;  %v445_v48 = vmul.f32 %v432_v45, %v417_v41  ;;  %v447_v55 = vmul.f32 %v442_v54, %v419_v49 }
 0x122   : > { %v444_v50 = vmul.f32 %v427_v37, %v416_v46  ;;  %v446_v53 = vmul.f32 %v437_v51, %v418_v47 }
 0x124   : > { %v448_v52 = vadd.f32 %v445_v48, %v444_v50 }
 0x126   : > { %v449_v56 = vadd.f32 %v448_v52, %v446_v53 }
 0x128   : > { %v450_v58 = vadd.f32 %v449_v56, %v447_v55 }
 0x12a   : > { %v451_v59 = vrot.slane %v450_v58, 4 }
 0x12c   : > { %v452_v61 = vadd.f32 %v451_v59, %v450_v58 }
 0x12e   : > { %v453_v62 = vrot.slane %v452_v61, 2 }
 0x130   : > { %v454_v0 = vadd.f32 %v453_v62, %v452_v61 }
 0x132   : > { %v455_v2 = vrot.slane %v454_v0, 1 }
 0x134   : > { %v456_v4 = vadd.f32 %v455_v2, %v454_v0 }
 0x136   : > { %v467_v5 = vadd.f32 %v466_v3, %v456_v4 }
 0x138   : > { %v468_v6 = vand.u32 2147483647, %v467_v5 }
 0x13a   : > { %469 = vst [vmem:[%s219_s4] sm:$0x1] %v468_v6 }
 0x13b   : > { %712 = shalt.err (!%p709_p3)
}
 0x13c   : > { %s713_s13 = scalar_lea.hbm %s481_s7, 16  ;;  %s717_s15 = scalar_lea.hbm %s1009_s5, 32 }
 0x13d   : > { %p714_p4 = scmp.ne.s32.totalorder %s481_s7, %s713_s13  ;;  %p718_p9 = scmp.lt.s32.totalorder %s481_s7, %s1009_s5 }
 0x13e   : > { %p719_p10 = scmp.lt.s32.totalorder %s717_s15, %s713_s13 }
 0x13f   : > { %p715_p7 = pnand %p714_p4, %p831_p5 }
 0x140   : > { %p720_p11 = por %p719_p10, %p718_p9 }
 0x141   : > { %p716_p8 = pneg %p715_p7 }
 0x143   : > { %p721_p12 = pnand %p720_p11, %p716_p8 }
 0x145   : > { %724 = shalt.err (!%p721_p12)
}
 0x146   : > { %657 = dma.vmem_to_hbm [thread:$0]  (%p831_p5), %s484_s24, 16, %s481_s7, %s471_s8  }
 0x147 PF: > { %p663_p13 = scmp.ge.s32.totalorder %s759_s23, 2  ;;  %s495_s18 = sand.u32 1, %s747_s20  }
 0x148   : > { %s496_s19 = scalar_lea.sflag [#allocation4], %s495_s18 }
 0x149   : > { %p660_p0 = pnand %p663_p13, %p835_p6 }
 0x14b   : > { %p661_p1 = pneg %p660_p0 }
 0x14d   : > { %742 = dma.done.wait (%p661_p1), %s496_s19, 16  }
 0x14e   : > { %744 = vsyncadd (%p661_p1), %s496_s19, 4294967280  ;;  %p17_p2 = scmp.ge.s32.totalorder %s819_s25, 4   ;;  %s1012_s20 = smov %s751_s21 }
 0x14f   : > { %s1013_s21 = smov %s755_s22  ;;  %s1014_s22 = smov %s829_s28 }
 0x150   : > { %s1015_s23 = smov %s819_s25  ;;  %19 = sbr.rel (!%p17_p2) target bundleno = 6 (0x6), region = 75 }
 0x155   :  { %500 = vsyncpa [#allocation4], 1 }
 0x156   :  { %502 = vsyncpa [#allocation4 + $0x1], 1 }

</bundles_post_ra>
